<compile_context>
chip_gen: v5e
topology: v5e:2x2
jax: 0.10.0
libtpu: 0.0.40
codegen_flags: <defaults>
</compile_context>

<pallas_src>
import math

import jax
import jax.numpy as jnp
from jax import lax
from jax.experimental import pallas as pl
from jax.experimental.pallas import tpu as pltpu


# ----------------------------------------------------------------------------
# helpers
# ----------------------------------------------------------------------------
def _choose_tile(dim, target, align):
    """Largest t <= target with dim % t == 0 and t % align == 0; else full dim."""
    if dim <= target:
        return dim
    t = (target // align) * align
    while t >= align:
        if dim % t == 0:
            return t
        t -= align
    return dim  # fall back: no tiling along this axis (always correct)


# ----------------------------------------------------------------------------
# Kernel 1: tiled linear  y = x @ W + b   (used for both qkv and proj layers)
# ----------------------------------------------------------------------------
def _linear_kernel(x_ref, w_ref, b_ref, o_ref, acc_ref):
    k = pl.program_id(2)

    @pl.when(k == 0)
    def _():
        acc_ref[...] = jnp.zeros_like(acc_ref)

    acc_ref[...] += jnp.dot(x_ref[...], w_ref[...],
                            preferred_element_type=jnp.float32)

    # bias added once, only on the final K step (no per-iteration re-broadcast)
    @pl.when(k == pl.num_programs(2) - 1)
    def _():
        o_ref[...] = (acc_ref[...] + b_ref[...].astype(jnp.float32)
                      ).astype(o_ref.dtype)


def linear_pallas(x, w, b, *, tm_target=256, tn_target=256, tk_target=512):
    """x: (M, K), w: (K, O), b: (O,) -> (M, O) = x @ w + b."""
    M, K = x.shape
    K2, O = w.shape
    assert K == K2
    tm = _choose_tile(M, tm_target, 8)
    tn = _choose_tile(O, tn_target, 128)
    tk = _choose_tile(K, tk_target, 128)
    b2 = b.reshape(1, O)
    grid = (M // tm, O // tn, K // tk)
    return pl.pallas_call(
        _linear_kernel,
        out_shape=jax.ShapeDtypeStruct((M, O), x.dtype),
        grid_spec=pltpu.PrefetchScalarGridSpec(
            num_scalar_prefetch=0,
            grid=grid,
            in_specs=[
                pl.BlockSpec((tm, tk), lambda i, j, k: (i, k)),
                pl.BlockSpec((tk, tn), lambda i, j, k: (k, j)),
                pl.BlockSpec((1, tn), lambda i, j, k: (0, j)),
            ],
            out_specs=pl.BlockSpec((tm, tn), lambda i, j, k: (i, j)),
            scratch_shapes=[pltpu.VMEM((tm, tn), jnp.float32)],
        ),
        compiler_params=pltpu.CompilerParams(
            dimension_semantics=("parallel", "parallel", "arbitrary")),
    )(x, w, b2)


# ----------------------------------------------------------------------------
# Kernel 2: multi-head SDPA.  One grid step = one batch element, ALL heads.
# Input is the raw qkv activation (B, N, 3C) with column layout (3, H, D);
# output is written directly in (B, N, C) layout for the proj matmul.
# ----------------------------------------------------------------------------
def _make_attn_kernel(num_heads, head_dim, scale):
    C = num_heads * head_dim

    def kernel(qkv_ref, o_ref):
        qkv = qkv_ref[0].astype(jnp.float32)                       # (N, 3C)
        outs = []
        for h in range(num_heads):                                 # unrolled; all heads per grid step
            lo = h * head_dim
            qh = qkv[:, lo:lo + head_dim]                          # (N, D)
            kh = qkv[:, C + lo:C + lo + head_dim]                  # (N, D)
            vh = qkv[:, 2 * C + lo:2 * C + lo + head_dim]          # (N, D)
            # contract last dims of q and k directly -> no explicit k.T
            s = lax.dot_general(qh, kh, (((1,), (1,)), ((), ())),
                                preferred_element_type=jnp.float32) * scale   # (N, N)
            s = s - jnp.max(s, axis=-1, keepdims=True)
            p = jnp.exp(s)
            p = p * pl.reciprocal(jnp.sum(p, axis=-1, keepdims=True),
                                  approx=True)
            outs.append(jnp.dot(p, vh, preferred_element_type=jnp.float32))   # (N, D)
        # single lane-dense store in (N, C) layout (no masked per-head stores)
        o_ref[0] = jnp.concatenate(outs, axis=-1).astype(o_ref.dtype)

    return kernel


def attention_pallas(qkv, num_heads):
    """qkv: (B, N, 3C) with 3C laid out as (3, H, D).  Returns (B, N, C)."""
    B, N, C3 = qkv.shape
    C = C3 // 3
    head_dim = C // num_heads
    scale = 1.0 / math.sqrt(head_dim)
    return pl.pallas_call(
        _make_attn_kernel(num_heads, head_dim, scale),
        out_shape=jax.ShapeDtypeStruct((B, N, C), qkv.dtype),
        grid=(B,),
        in_specs=[pl.BlockSpec((1, N, 3 * C), lambda b: (b, 0, 0))],
        out_specs=pl.BlockSpec((1, N, C), lambda b: (b, 0, 0)),
        compiler_params=pltpu.CompilerParams(
            dimension_semantics=("parallel",)),
    )(qkv)


# ----------------------------------------------------------------------------
# Module wrapper: only free reshapes between pallas_calls (no HBM transposes)
# ----------------------------------------------------------------------------
def forensic_attention(x, params, num_heads):
    B, N, C = x.shape
    x_flat = x.reshape(B * N, C)
    qkv = linear_pallas(x_flat, params["w_qkv"], params["b_qkv"])      # (B*N, 3C)
    attn = attention_pallas(qkv.reshape(B, N, 3 * C), num_heads)       # (B, N, C)
    out = linear_pallas(attn.reshape(B * N, C),
                        params["w_proj"], params["b_proj"])            # (B*N, C)
    return out.reshape(B, N, C)


# Pure-JAX reference for correctness check
def forensic_attention_ref(x, params, num_heads):
    B, N, C = x.shape
    H = num_heads
    D = C // H
    qkv = x @ params["w_qkv"] + params["b_qkv"]
    qkv = qkv.reshape(B, N, 3, H, D).transpose(2, 0, 3, 1, 4)
    q, k, v = qkv[0], qkv[1], qkv[2]
    s = jnp.einsum("bhnd,bhmd->bhnm", q, k) / math.sqrt(D)
    p = jax.nn.softmax(s, axis=-1)
    o = jnp.einsum("bhnm,bhmd->bhnd", p, v)
    o = o.transpose(0, 2, 1, 3).reshape(B, N, C)
    return o @ params["w_proj"] + params["b_proj"]


def init_params(key, embed_dim):
    k1, k2, k3, k4 = jax.random.split(key, 4)
    bound = 1.0 / math.sqrt(embed_dim)
    return {
        # stored as (in, out):  y = x @ W + b  ==  nn.Linear(x) with W = W_pt.T
        "w_qkv": jax.random.uniform(k1, (embed_dim, 3 * embed_dim),
                                    jnp.float32, -bound, bound),
        "b_qkv": jax.random.uniform(k2, (3 * embed_dim,),
                                    jnp.float32, -bound, bound),
        "w_proj": jax.random.uniform(k3, (embed_dim, embed_dim),
                                     jnp.float32, -bound, bound),
        "b_proj": jax.random.uniform(k4, (embed_dim,),
                                     jnp.float32, -bound, bound),
    }


if __name__ == "__main__":
    B, N, C = 2, 8, 32      # batch, sequence, embed_dim
    num_heads = 8           # head_dim = 4

    key = jax.random.PRNGKey(0)
    kx, kp = jax.random.split(key)
    x = jax.random.normal(kx, (B, N, C), jnp.float32)
    params = init_params(kp, C)

    out = jax.block_until_ready(forensic_attention(x, params, num_heads))
    ref = jax.block_until_ready(forensic_attention_ref(x, params, num_heads))

    assert out.shape == (B, N, C)
    max_err = jnp.max(jnp.abs(out - ref))
    assert jnp.allclose(out, ref, atol=2e-3, rtol=2e-3), f"max err {max_err}"
    print("KERNEL_OK")
</pallas_src>

<mosaic_0001>
module attributes {stable_mosaic.version = 11 : i64} {
  func.func @_linear_kernel(%arg0: i32, %arg1: i32, %arg2: i32, %arg3: memref<16x32xf32, #tpu.memory_space<vmem>>, %arg4: memref<32x96xf32, #tpu.memory_space<vmem>>, %arg5: memref<1x96xf32, #tpu.memory_space<vmem>>, %arg6: memref<16x96xf32, #tpu.memory_space<vmem>>, %arg7: memref<16x96xf32, #tpu.memory_space<vmem>>) attributes {dimension_semantics = [#tpu.dimension_semantics<parallel>, #tpu.dimension_semantics<parallel>, #tpu.dimension_semantics<arbitrary>], iteration_bounds = array<i64: 1, 1, 1>, scalar_prefetch = 0 : i64, scratch_operands = 1 : i64, tpu.core_type = #tpu.core_type<tc>, window_params = [{transform_indices = @transform_0, window_bounds = array<i64: 16, 32>}, {transform_indices = @transform_1, window_bounds = array<i64: 32, 96>}, {transform_indices = @transform_2, window_bounds = array<i64: 1, 96>}, {transform_indices = @transform_3, window_bounds = array<i64: 16, 96>}]} {
    %c0_i32 = arith.constant 0 : i32
    %0 = arith.cmpi eq, %arg2, %c0_i32 : i32
    %1 = arith.extui %0 : i1 to i32
    %c0_i32_0 = arith.constant 0 : i32
    %2 = arith.cmpi ne, %1, %c0_i32_0 : i32
    scf.if %2 {
      %cst_10 = arith.constant 0.000000e+00 : f32
      %12 = vector.broadcast %cst_10 : f32 to vector<16x96xf32>
      %c0_11 = arith.constant 0 : index
      %c0_12 = arith.constant 0 : index
      %13 = vector.load %arg7[%c0_11, %c0_12] : memref<16x96xf32, #tpu.memory_space<vmem>>, vector<16x96xf32>
      tpu.vector_store %arg7[%c0_11, %c0_12], %12 {strides = array<i32>} : memref<16x96xf32, #tpu.memory_space<vmem>>, vector<16x96xf32>,
    } else {
    }
    %c0 = arith.constant 0 : index
    %c0_1 = arith.constant 0 : index
    %3 = vector.load %arg7[%c0, %c0_1] : memref<16x96xf32, #tpu.memory_space<vmem>>, vector<16x96xf32>
    %c0_2 = arith.constant 0 : index
    %c0_3 = arith.constant 0 : index
    %4 = vector.load %arg3[%c0_2, %c0_3] : memref<16x32xf32, #tpu.memory_space<vmem>>, vector<16x32xf32>
    %c0_4 = arith.constant 0 : index
    %c0_5 = arith.constant 0 : index
    %5 = vector.load %arg4[%c0_4, %c0_5] : memref<32x96xf32, #tpu.memory_space<vmem>>, vector<32x96xf32>
    %cst = arith.constant dense<0.000000e+00> : vector<16x96xf32>
    %6 = tpu.matmul %4, %5, %cst {dimension_numbers = #tpu.dot_dimension_numbers<[1], [0], [0], [1], [0, 0, 1, 1], [], []>} : vector<16x32xf32>, vector<32x96xf32>, vector<16x96xf32> -> vector<16x96xf32>
    %7 = arith.addf %3, %6 : vector<16x96xf32>
    %c0_6 = arith.constant 0 : index
    %c0_7 = arith.constant 0 : index
    %8 = vector.load %arg7[%c0_6, %c0_7] : memref<16x96xf32, #tpu.memory_space<vmem>>, vector<16x96xf32>
    tpu.vector_store %arg7[%c0_6, %c0_7], %7 {strides = array<i32>} : memref<16x96xf32, #tpu.memory_space<vmem>>, vector<16x96xf32>,
    %c0_i32_8 = arith.constant 0 : i32
    %9 = arith.cmpi eq, %arg2, %c0_i32_8 : i32
    %10 = arith.extui %9 : i1 to i32
    %c0_i32_9 = arith.constant 0 : i32
    %11 = arith.cmpi ne, %10, %c0_i32_9 : i32
    scf.if %11 {
      %c0_10 = arith.constant 0 : index
      %c0_11 = arith.constant 0 : index
      %12 = vector.load %arg7[%c0_10, %c0_11] : memref<16x96xf32, #tpu.memory_space<vmem>>, vector<16x96xf32>
      %c0_12 = arith.constant 0 : index
      %c0_13 = arith.constant 0 : index
      %13 = vector.load %arg5[%c0_12, %c0_13] : memref<1x96xf32, #tpu.memory_space<vmem>>, vector<1x96xf32>
      %14 = vector.broadcast %13 : vector<1x96xf32> to vector<16x96xf32>
      %15 = arith.addf %12, %14 : vector<16x96xf32>
      %c0_14 = arith.constant 0 : index
      %c0_15 = arith.constant 0 : index
      %16 = vector.load %arg6[%c0_14, %c0_15] : memref<16x96xf32, #tpu.memory_space<vmem>>, vector<16x96xf32>
      tpu.vector_store %arg6[%c0_14, %c0_15], %15 {strides = array<i32>} : memref<16x96xf32, #tpu.memory_space<vmem>>, vector<16x96xf32>,
    } else {
    }
    return
  }
  func.func @transform_0(%arg0: i32, %arg1: i32, %arg2: i32) -> (i32, i32) {
    %c0_i32 = arith.constant 0 : i32
    return %arg0, %arg2 : i32, i32
  }
  func.func @transform_1(%arg0: i32, %arg1: i32, %arg2: i32) -> (i32, i32) {
    %c0_i32 = arith.constant 0 : i32
    return %arg2, %arg1 : i32, i32
  }
  func.func @transform_2(%arg0: i32, %arg1: i32, %arg2: i32) -> (i32, i32) {
    %c0_i32 = arith.constant 0 : i32
    %c0_i32_0 = arith.constant 0 : i32
    return %c0_i32, %arg1 : i32, i32
  }
  func.func @transform_3(%arg0: i32, %arg1: i32, %arg2: i32) -> (i32, i32) {
    %c0_i32 = arith.constant 0 : i32
    return %arg0, %arg1 : i32, i32
  }
}

</mosaic_0001>

<bundles_post_ra>
// kernel: tpu_custom_call.1
= control target key start
LH: loop header
LB: loop body
LE: loop exit
PB: predicated region body
PF: predicated region fallthrough
CT: control target
= control target key end

     0   :  { %8 = vsyncpa [#allocation4], 0  ;;  %s274_s0 = inlined_call_operand.hbm [shape: f32[16,32], index: 0, kind: input, shape index: {}]   ;;  %s275_s1 = inlined_call_operand.hbm [shape: f32[32,96], index: 1, kind: input, shape index: {}]   ;;  %s276_s2 = inlined_call_operand.vmem [shape: f32[1,96], index: 2, kind: input, shape index: {}]   ;;  %s277_s3 = inlined_call_operand.hbm [shape: f32[16,96], index: 3, kind: output, shape index: {}]  }
   0x1   :  { %9 = vsyncpa [#allocation7], 0 }
   0x2   :  { %10 = vsyncpa [#allocation5], 0  ;;  %s15_s14 = sshll.u32 %s274_s0, 4  ;;  %s221_s15 = smov [#allocation3]   ;;  %s16_s14 = int_to_ptr.hbm [resolvable:$true] %s15_s14 }
   0x3   :  { %s17_s16 = sshll.u32 %s221_s15, 4  ;;  %s28_s19 = sshll.u32 %s275_s1, 4  ;;  %s18_s16 = int_to_ptr.vmem [resolvable:$true] %s17_s16  ;;  %s29_s19 = int_to_ptr.hbm [resolvable:$true] %s28_s19 }
   0x4   :  { %s222_s20 = smov 128   ;;  %s223_s21 = smov 8  }
   0x5   :  { %23 = dma.hbm_to_vmem [thread:$0]  %s16_s14, 256, %s18_s16, [#allocation4], %s222_s20, %s222_s20, %s223_s21  }
   0x6   :  { %s224_s22 = smov [#allocation6]  }
   0x7   :  { %s30_s23 = sshll.u32 %s224_s22, 4  ;;  %s31_s23 = int_to_ptr.vmem [resolvable:$true] %s30_s23 }
   0x8   :  { %36 = dma.hbm_to_vmem [thread:$0]  %s29_s19, 512, %s31_s23, [#allocation7], %s222_s20, %s222_s20, %s223_s21  }
   0x9   :  { %215 = dma.done.wait [#allocation4], 256  }
   0xa   :  { %216 = vsyncadd [#allocation4], 4294967040 }
   0xb   :  { %217 = dma.done.wait [#allocation7], 512  }
   0xc   :  { %218 = vsyncadd [#allocation7], 4294966784  ;;  %vm51_vm0 = vcmask 785408   ;;  %v225_v0 = vmov 0.0   ;;  %v61_v1 = vld [vmem:[#allocation6 + $0x18] sm:$0xff]  ;;  %v60_v2 = vld [vmem:[#allocation6 + $0x10] sm:$0xff] }
   0xd   :  { %52 = vst.msk [vmem:[#allocation2] sm:$0xff] %vm51_vm0, %v225_v0  ;;  %81 = vmatpush.msra.mxu0 %v61_v1  ;;  %132 = vmatpush.msra.mxu1 %v61_v1  ;;  %v59_v3 = vld [vmem:[#allocation6 + $0x8] sm:$0xff]  ;;  %v58_v4 = vld [vmem:[#allocation6] sm:$0xff]  ;;  %v56_v5 = vld [vmem:[#allocation3] sm:$0xff]  ;;  %vm62_vm1 = vcmask 261120   ;;  %s226_s24 = smov [#allocation8]  }
   0xe   :  { %53 = vst.msk [vmem:[#allocation2 + $0x8] sm:$0xff] %vm51_vm0, %v225_v0  ;;  %v57_v6 = vld [vmem:[#allocation3 + $0x8] sm:$0xff]  ;;  %v142_v13 = vld [vmem:[%s276_s2] ss:$0 sm:$0xff]  ;;  %s114_s25 = sshll.u32 %s226_s24, 4  ;;  %s116_s28 = sshll.u32 %s277_s3, 4  ;;  %s115_s25 = int_to_ptr.vmem [resolvable:$true] %s114_s25  ;;  %s117_s28 = int_to_ptr.hbm [resolvable:$true] %s116_s28 }
   0xf   :  { %82 = vmatpush.msra.mxu0 %v60_v2  ;;  %133 = vmatpush.msra.mxu1 %v60_v2 }
  0x11   :  { %83 = vmatpush.msra.mxu0 %v59_v3  ;;  %134 = vmatpush.msra.mxu1 %v59_v3 }
  0x13   :  { %84 = vmatpush.msra.mxu0 %v58_v4  ;;  %135 = vmatpush.msra.mxu1 %v58_v4 }
  0x14   :  { %130 = vmatmul.msk.f32.vlgmr.msra.gmra.mxu0 %vm62_vm1, %v56_v5  ;;  %131 = vmatmul.msk.f32.vlgmr.msra.gmra.mxu1 %vm62_vm1, %v57_v6  ;;  %v54_v7 = vld [vmem:[#allocation2] sm:$0xff] }
  0x15   :  { %v55_v8 = vld [vmem:[#allocation2 + $0x8] sm:$0xff] }
  0x91   :  { %v86_v9 = vpop.f32.mrf.mxu0  ;;  %v89_v10 = vpop.f32.mrf.mxu1 }
  0x92   :  { %v92_v11 = vadd.f32 %v86_v9, %v54_v7  ;;  %v93_v12 = vadd.f32 %v89_v10, %v55_v8 }
  0x94   :  { %95 = vst.msk [vmem:[#allocation2] sm:$0xff] %vm51_vm0, %v92_v11 }
  0x95   :  { %96 = vst.msk [vmem:[#allocation2 + $0x8] sm:$0xff] %vm51_vm0, %v93_v12 }
  0x9b   :  { %v100_v14 = vld [vmem:[#allocation2] sm:$0xff] }
  0x9c   :  { %v101_v15 = vld [vmem:[#allocation2 + $0x8] sm:$0xff]  ;;  %v106_v16 = vadd.f32 %v142_v13, %v100_v14 }
  0x9d   :  { %v107_v17 = vadd.f32 %v142_v13, %v101_v15 }
  0x9e   :  { %108 = vst.msk [vmem:[#allocation8] sm:$0xff] %vm51_vm0, %v106_v16 }
  0x9f   :  { %109 = vst.msk [vmem:[#allocation8 + $0x8] sm:$0xff] %vm51_vm0, %v107_v17 }
  0xa0   :  { %122 = dma.vmem_to_hbm [thread:$0]  %s115_s25, 256, %s117_s28, [#allocation5], %s222_s20, %s222_s20, %s223_s21  }
  0xa1   :  { %219 = dma.done.wait [#allocation5], 256  }
  0xa2   :  { %220 = vsyncadd [#allocation5], 4294967040 }
  0xa3   :  { %127 = vsyncpa [#allocation4], 1 }
  0xa4   :  { %128 = vsyncpa [#allocation7], 1 }
  0xa5   :  { %129 = vsyncpa [#allocation5], 1 }

</bundles_post_ra>
